<compile_context>
chip_gen: v7x
topology: tpu7x:2x2x1
jax: 0.10.0
libtpu: 0.0.40
codegen_flags: <defaults>
</compile_context>

<pallas_src>
import jax
import jax.numpy as jnp
from jax.experimental import pallas as pl
from jax.experimental.pallas import tpu as pltpu

EPS = 1e-5  # nn.BatchNorm3d default eps

_LANE = 128
_SUBLANE = 8
_BLOCK_BYTE_BUDGET = 2 * 1024 * 1024  # per f32 block; double-buffered in+out fits all gens


def _round_up(x, m):
    return ((x + m - 1) // m) * m


def _choose_m_tiling(m):
    """Pick (tile_m, padded_M): tile_m multiple of 128, padding overhead <= ~12.5%."""
    m128 = _round_up(m, _LANE)
    for tile in (2048, 1024, 512, 256, 128):
        mp = _round_up(m128, tile)
        if (mp - m128) <= max(m128 // 8, 0) or tile == _LANE:
            return tile, mp
    return _LANE, m128


def _choose_tile_r(r, tile_m):
    """Sublane-packed row block (multiple of 8) under the VMEM block budget."""
    if r % _SUBLANE != 0:
        return r  # full-extent dim is always a legal block shape
    max_rows = max(_SUBLANE, _BLOCK_BYTE_BUDGET // (tile_m * 4))
    # Leave >= 2 row blocks when possible so the "parallel" row axis of the
    # stats pass can shard across v7x's two TensorCores.
    if r >= 2 * _SUBLANE:
        max_rows = min(max_rows, r // 2)
    best = _SUBLANE
    cand = _SUBLANE
    while cand <= min(r, max_rows):
        if r % cand == 0:
            best = cand
        cand *= 2
    return best


def _stats_kernel(x_ref, sum_ref, sumsq_ref):
    # Per-row partial sums accumulated across the (arbitrary) M-tile axis.
    @pl.when(pl.program_id(1) == 0)
    def _():
        sum_ref[...] = jnp.zeros_like(sum_ref)
        sumsq_ref[...] = jnp.zeros_like(sumsq_ref)

    x = x_ref[...].astype(jnp.float32)
    sum_ref[...] += jnp.sum(x, axis=-1, keepdims=True)
    sumsq_ref[...] += jnp.sum(x * x, axis=-1, keepdims=True)


def _normalize_kernel(x_ref, scale_ref, shift_ref, o_ref):
    # scale/shift are per-row (tile_r, 1) -> one mul + add per element.
    x = x_ref[...].astype(jnp.float32)
    o_ref[...] = (x * scale_ref[...] + shift_ref[...]).astype(o_ref.dtype)


def norm_forward(x, gamma, beta, eps=EPS):
    """BatchNorm3d forward with batch statistics. x: (N, C, D, H, W)."""
    N, C, D, H, W = x.shape
    R = N * C
    M = D * H * W

    x2 = x.reshape(R, M)  # free reshape, no transpose
    tile_m, m_pad = _choose_m_tiling(M)
    if m_pad != M:
        x2 = jnp.pad(x2, ((0, 0), (0, m_pad - M)))  # zeros: do not perturb sums
    tile_r = _choose_tile_r(R, tile_m)

    grid = (R // tile_r, m_pad // tile_m)

    # -------- Pass 1: per-row sum / sum-of-squares --------
    sums, sumsqs = pl.pallas_call(
        _stats_kernel,
        out_shape=(
            jax.ShapeDtypeStruct((R, 1), jnp.float32),
            jax.ShapeDtypeStruct((R, 1), jnp.float32),
        ),
        grid=grid,
        in_specs=[pl.BlockSpec((tile_r, tile_m), lambda i, j: (i, j))],
        out_specs=(
            pl.BlockSpec((tile_r, 1), lambda i, j: (i, 0)),
            pl.BlockSpec((tile_r, 1), lambda i, j: (i, 0)),
        ),
        compiler_params=pltpu.CompilerParams(
            dimension_semantics=("parallel", "arbitrary")),
    )(x2)

    # -------- Tiny per-channel finish + scale/shift precompute (plain JAX) --------
    count = jnp.float32(N * M)
    ch_sum = jnp.sum(sums.reshape(N, C), axis=0)
    ch_sumsq = jnp.sum(sumsqs.reshape(N, C), axis=0)
    mean = ch_sum / count
    var = jnp.maximum(ch_sumsq / count - mean * mean, 0.0)  # clamp vs cancellation
    inv_std = jax.lax.rsqrt(var + eps)
    scale_c = gamma.astype(jnp.float32) * inv_std            # (C,)
    shift_c = beta.astype(jnp.float32) - mean * scale_c      # (C,)
    scale_r = jnp.broadcast_to(scale_c[None, :], (N, C)).reshape(R, 1)
    shift_r = jnp.broadcast_to(shift_c[None, :], (N, C)).reshape(R, 1)

    # -------- Pass 2: normalize (fully parallel, lane-dense tiles) --------
    out2 = pl.pallas_call(
        _normalize_kernel,
        out_shape=jax.ShapeDtypeStruct((R, m_pad), x.dtype),
        grid=grid,
        in_specs=[
            pl.BlockSpec((tile_r, tile_m), lambda i, j: (i, j)),
            pl.BlockSpec((tile_r, 1), lambda i, j: (i, 0)),
            pl.BlockSpec((tile_r, 1), lambda i, j: (i, 0)),
        ],
        out_specs=pl.BlockSpec((tile_r, tile_m), lambda i, j: (i, j)),
        compiler_params=pltpu.CompilerParams(
            dimension_semantics=("parallel", "parallel")),
    )(x2, scale_r, shift_r)

    return out2[:, :M].reshape(N, C, D, H, W)


def _reference(x, gamma, beta, eps=EPS):
    mean = jnp.mean(x, axis=(0, 2, 3, 4), keepdims=True)
    var = jnp.mean((x - mean) ** 2, axis=(0, 2, 3, 4), keepdims=True)
    g = gamma.reshape(1, -1, 1, 1, 1)
    b = beta.reshape(1, -1, 1, 1, 1)
    return (x - mean) / jnp.sqrt(var + eps) * g + b


if __name__ == "__main__":
    key = jax.random.PRNGKey(0)
    kx, kg, kb = jax.random.split(key, 3)

    # Small 5-D BatchNorm3d input: (N, C, D, H, W)
    N, C, D, H, W = 2, 4, 4, 8, 8
    x = jax.random.normal(kx, (N, C, D, H, W), dtype=jnp.float32)
    gamma = 1.0 + 0.1 * jax.random.normal(kg, (C,), dtype=jnp.float32)
    beta = 0.1 * jax.random.normal(kb, (C,), dtype=jnp.float32)

    norm_fn = jax.jit(norm_forward)
    y = jax.block_until_ready(norm_fn(x, gamma, beta))

    y_ref = _reference(x, gamma, beta)
    assert jnp.allclose(y, y_ref, atol=1e-3, rtol=1e-3), "mismatch vs reference"

    print("KERNEL_OK")
</pallas_src>

<mosaic_0001>
module attributes {stable_mosaic.version = 11 : i64} {
  func.func @_stats_kernel(%arg0: i32, %arg1: i32, %arg2: memref<8x256xf32, #tpu.memory_space<vmem>>, %arg3: memref<8x1xf32, #tpu.memory_space<vmem>>, %arg4: memref<8x1xf32, #tpu.memory_space<vmem>>) attributes {dimension_semantics = [#tpu.dimension_semantics<parallel>, #tpu.dimension_semantics<arbitrary>], iteration_bounds = array<i64: 1, 1>, scalar_prefetch = 0 : i64, scratch_operands = 0 : i64, tpu.core_type = #tpu.core_type<tc>, window_params = [{transform_indices = @transform_0, window_bounds = array<i64: 8, 256>}, {transform_indices = @transform_1, window_bounds = array<i64: 8, 1>}, {transform_indices = @transform_2, window_bounds = array<i64: 8, 1>}]} {
    %c0_i32 = arith.constant 0 : i32
    %0 = arith.cmpi eq, %arg1, %c0_i32 : i32
    %1 = arith.extui %0 : i1 to i32
    %c0_i32_0 = arith.constant 0 : i32
    %2 = arith.cmpi ne, %1, %c0_i32_0 : i32
    scf.if %2 {
      %cst_11 = arith.constant 0.000000e+00 : f32
      %15 = vector.broadcast %cst_11 : f32 to vector<8x1xf32>
      %c0_12 = arith.constant 0 : index
      %c0_13 = arith.constant 0 : index
      %16 = vector.load %arg3[%c0_12, %c0_13] : memref<8x1xf32, #tpu.memory_space<vmem>>, vector<8x1xf32>
      tpu.vector_store %arg3[%c0_12, %c0_13], %15 {strides = array<i32>} : memref<8x1xf32, #tpu.memory_space<vmem>>, vector<8x1xf32>,
      %cst_14 = arith.constant 0.000000e+00 : f32
      %17 = vector.broadcast %cst_14 : f32 to vector<8x1xf32>
      %c0_15 = arith.constant 0 : index
      %c0_16 = arith.constant 0 : index
      %18 = vector.load %arg4[%c0_15, %c0_16] : memref<8x1xf32, #tpu.memory_space<vmem>>, vector<8x1xf32>
      tpu.vector_store %arg4[%c0_15, %c0_16], %17 {strides = array<i32>} : memref<8x1xf32, #tpu.memory_space<vmem>>, vector<8x1xf32>,
    } else {
    }
    %c0 = arith.constant 0 : index
    %c0_1 = arith.constant 0 : index
    %3 = vector.load %arg2[%c0, %c0_1] : memref<8x256xf32, #tpu.memory_space<vmem>>, vector<8x256xf32>
    %c0_2 = arith.constant 0 : index
    %c0_3 = arith.constant 0 : index
    %4 = vector.load %arg3[%c0_2, %c0_3] : memref<8x1xf32, #tpu.memory_space<vmem>>, vector<8x1xf32>
    %cst = arith.constant dense<0.000000e+00> : vector<8xf32>
    %5 = vector.multi_reduction <add>, %3, %cst [1] : vector<8x256xf32> to vector<8xf32>
    %6 = vector.shape_cast %5 : vector<8xf32> to vector<8x1xf32>
    %7 = arith.addf %4, %6 : vector<8x1xf32>
    %c0_4 = arith.constant 0 : index
    %c0_5 = arith.constant 0 : index
    %8 = vector.load %arg3[%c0_4, %c0_5] : memref<8x1xf32, #tpu.memory_space<vmem>>, vector<8x1xf32>
    tpu.vector_store %arg3[%c0_4, %c0_5], %7 {strides = array<i32>} : memref<8x1xf32, #tpu.memory_space<vmem>>, vector<8x1xf32>,
    %c0_6 = arith.constant 0 : index
    %c0_7 = arith.constant 0 : index
    %9 = vector.load %arg4[%c0_6, %c0_7] : memref<8x1xf32, #tpu.memory_space<vmem>>, vector<8x1xf32>
    %10 = arith.mulf %3, %3 : vector<8x256xf32>
    %cst_8 = arith.constant dense<0.000000e+00> : vector<8xf32>
    %11 = vector.multi_reduction <add>, %10, %cst_8 [1] : vector<8x256xf32> to vector<8xf32>
    %12 = vector.shape_cast %11 : vector<8xf32> to vector<8x1xf32>
    %13 = arith.addf %9, %12 : vector<8x1xf32>
    %c0_9 = arith.constant 0 : index
    %c0_10 = arith.constant 0 : index
    %14 = vector.load %arg4[%c0_9, %c0_10] : memref<8x1xf32, #tpu.memory_space<vmem>>, vector<8x1xf32>
    tpu.vector_store %arg4[%c0_9, %c0_10], %13 {strides = array<i32>} : memref<8x1xf32, #tpu.memory_space<vmem>>, vector<8x1xf32>,
    return
  }
  func.func @transform_0(%arg0: i32, %arg1: i32) -> (i32, i32) {
    %c0_i32 = arith.constant 0 : i32
    return %arg0, %arg1 : i32, i32
  }
  func.func @transform_1(%arg0: i32, %arg1: i32) -> (i32, i32) {
    %c0_i32 = arith.constant 0 : i32
    %c0_i32_0 = arith.constant 0 : i32
    return %arg0, %c0_i32 : i32, i32
  }
  func.func @transform_2(%arg0: i32, %arg1: i32) -> (i32, i32) {
    %c0_i32 = arith.constant 0 : i32
    %c0_i32_0 = arith.constant 0 : i32
    return %arg0, %c0_i32 : i32, i32
  }
}

module attributes {stable_mosaic.version = 11 : i64} {
  func.func @_normalize_kernel(%arg0: i32, %arg1: i32, %arg2: memref<8x256xf32, #tpu.memory_space<vmem>>, %arg3: memref<8x1xf32, #tpu.memory_space<vmem>>, %arg4: memref<8x1xf32, #tpu.memory_space<vmem>>, %arg5: memref<8x256xf32, #tpu.memory_space<vmem>>) attributes {dimension_semantics = [#tpu.dimension_semantics<parallel>, #tpu.dimension_semantics<parallel>], iteration_bounds = array<i64: 1, 1>, scalar_prefetch = 0 : i64, scratch_operands = 0 : i64, tpu.core_type = #tpu.core_type<tc>, window_params = [{transform_indices = @transform_0, window_bounds = array<i64: 8, 256>}, {transform_indices = @transform_1, window_bounds = array<i64: 8, 1>}, {transform_indices = @transform_2, window_bounds = array<i64: 8, 1>}, {transform_indices = @transform_3, window_bounds = array<i64: 8, 256>}]} {
    %c0 = arith.constant 0 : index
    %c0_0 = arith.constant 0 : index
    %0 = vector.load %arg2[%c0, %c0_0] : memref<8x256xf32, #tpu.memory_space<vmem>>, vector<8x256xf32>
    %c0_1 = arith.constant 0 : index
    %c0_2 = arith.constant 0 : index
    %1 = vector.load %arg3[%c0_1, %c0_2] : memref<8x1xf32, #tpu.memory_space<vmem>>, vector<8x1xf32>
    %2 = vector.broadcast %1 : vector<8x1xf32> to vector<8x256xf32>
    %3 = arith.mulf %0, %2 : vector<8x256xf32>
    %c0_3 = arith.constant 0 : index
    %c0_4 = arith.constant 0 : index
    %4 = vector.load %arg4[%c0_3, %c0_4] : memref<8x1xf32, #tpu.memory_space<vmem>>, vector<8x1xf32>
    %5 = vector.broadcast %4 : vector<8x1xf32> to vector<8x256xf32>
    %6 = arith.addf %3, %5 : vector<8x256xf32>
    %c0_5 = arith.constant 0 : index
    %c0_6 = arith.constant 0 : index
    %7 = vector.load %arg5[%c0_5, %c0_6] : memref<8x256xf32, #tpu.memory_space<vmem>>, vector<8x256xf32>
    tpu.vector_store %arg5[%c0_5, %c0_6], %6 {strides = array<i32>} : memref<8x256xf32, #tpu.memory_space<vmem>>, vector<8x256xf32>,
    return
  }
  func.func @transform_0(%arg0: i32, %arg1: i32) -> (i32, i32) {
    %c0_i32 = arith.constant 0 : i32
    return %arg0, %arg1 : i32, i32
  }
  func.func @transform_1(%arg0: i32, %arg1: i32) -> (i32, i32) {
    %c0_i32 = arith.constant 0 : i32
    %c0_i32_0 = arith.constant 0 : i32
    return %arg0, %c0_i32 : i32, i32
  }
  func.func @transform_2(%arg0: i32, %arg1: i32) -> (i32, i32) {
    %c0_i32 = arith.constant 0 : i32
    %c0_i32_0 = arith.constant 0 : i32
    return %arg0, %c0_i32 : i32, i32
  }
  func.func @transform_3(%arg0: i32, %arg1: i32) -> (i32, i32) {
    %c0_i32 = arith.constant 0 : i32
    return %arg0, %arg1 : i32, i32
  }
}

</mosaic_0001>

<bundles_post_ra>
// kernel: norm_forward.2
= control target key start
LH: loop header
LB: loop body
LE: loop exit
PB: predicated region body
PF: predicated region fallthrough
CT: control target
= control target key end

     0   :  { %vm14_vm0 = vcmask 7168   ;;  %v43_v2 = vmov 0.0   ;;  %s87_s0 = inlined_call_operand.vmem [shape: f32[8,256], index: 0, kind: input, shape index: {}]   ;;  %s88_s1 = inlined_call_operand.vmem [shape: f32[8,1], index: 1, kind: output, shape index: {0}]   ;;  %s89_s2 = inlined_call_operand.vmem [shape: f32[8,1], index: 2, kind: output, shape index: {1}]  }
   0x1   :  { %v17_v0 = vld [vmem:[%s87_s0] sm:$0xff]  ;;  %v18_v1 = vld [vmem:[%s87_s0 + $0x8] sm:$0xff]  ;;  %15 = vst.msk [vmem:[%s88_s1] sm:$0xff] %vm14_vm0, %v43_v2  ;;  %16 = vst.msk [vmem:[%s89_s2] sm:$0xff] %vm14_vm0, %v43_v2 }
   0x2   :  { %v20_v3 = vadd.f32 %v18_v1, %v17_v0  ;;  %v27_v4 = vmul.f32 %v17_v0, %v17_v0  ;;  %v28_v5 = vmul.f32 %v18_v1, %v18_v1 }
   0x4   :  { %21 = vadd.xlane.f32.xlu0 %v20_v3  ;;  %v29_v6 = vadd.f32 %v28_v5, %v27_v4 }
   0x8   :  { %30 = vadd.xlane.f32.xlu0 %v29_v6  ;;  %v19_v7 = vld [vmem:[%s88_s1] sm:$0xff] }
   0x9   :  { %v26_v10 = vld [vmem:[%s89_s2] sm:$0xff] }
  0x91   :  { %v22_v8 = vpop.xlane.xlu0 %21 }
  0x92   :  { %v23_v9 = vadd.f32 %v22_v8, %v19_v7 }
  0x94   :  { %25 = vst.msk [vmem:[%s88_s1] sm:$0xff] %vm14_vm0, %v23_v9 }
  0x95   :  { %v31_v11 = vpop.xlane.xlu0 %30 }
  0x96   :  { %v32_v12 = vadd.f32 %v31_v11, %v26_v10 }
  0x98   :  { %33 = vst.msk [vmem:[%s89_s2] sm:$0xff] %vm14_vm0, %v32_v12 }

// kernel: norm_forward.3
= control target key start
LH: loop header
LB: loop body
LE: loop exit
PB: predicated region body
PF: predicated region fallthrough
CT: control target
= control target key end

     0   :  { %v40_v0 = vmov 0   ;;  %s79_s1 = inlined_call_operand.vmem [shape: f32[8,1], index: 1, kind: input, shape index: {}]   ;;  %s80_s2 = inlined_call_operand.vmem [shape: f32[8,1], index: 2, kind: input, shape index: {}]   ;;  %s81_s0 = inlined_call_operand.vmem [shape: f32[8,256], index: 0, kind: input, shape index: {}]   ;;  %s82_s3 = inlined_call_operand.vmem [shape: f32[8,256], index: 3, kind: output, shape index: {}]  }
   0x1   :  { %39 = vset.pattern.permute.xlu0 %v40_v0  ;;  %v16_v1 = vld [vmem:[%s79_s1] sm:$0xff]  ;;  %v15_v5 = vld [vmem:[%s81_s0 + $0x8] sm:$0xff] }
   0x2   :  { %19 = vperm.xlu0 %39, %v16_v1   ;;  %v24_v2 = vld [vmem:[%s80_s2] sm:$0xff] }
   0x3   :  { %v14_v4 = vld [vmem:[%s81_s0] sm:$0xff] }
   0x6   :  { %27 = vperm.xlu0 %39, %v24_v2  }
  0x81   :  { %v20_v3 = vpop.permute.xlu0 %19 }
  0x82   :  { %v22_v6 = vmul.f32 %v20_v3, %v14_v4  ;;  %v23_v7 = vmul.f32 %v20_v3, %v15_v5 }
  0x85   :  { %v28_v8 = vpop.permute.xlu0 %27 }
  0x86   :  { %v30_v9 = vadd.f32 %v28_v8, %v22_v6  ;;  %v31_v10 = vadd.f32 %v28_v8, %v23_v7 }
  0x88   :  { %32 = vst [vmem:[%s82_s3] sm:$0xff] %v30_v9  ;;  %33 = vst [vmem:[%s82_s3 + $0x8] sm:$0xff] %v31_v10 }

</bundles_post_ra>
